<compile_context>
chip_gen: v7x
topology: tpu7x:2x2x1
jax: 0.10.0
libtpu: 0.0.40
codegen_flags: <defaults>
</compile_context>

<pallas_src>
import functools
import math

import jax
import jax.numpy as jnp
import numpy as np
from jax.experimental import pallas as pl
from jax.experimental.pallas import tpu as pltpu


def _round_up(x, m):
    return (x + m - 1) // m * m


def _round_down(x, m):
    return x // m * m


def _vmem_budget_bytes():
    """Generation-gated VMEM budget (~3/4 of physical: ~96 MiB on 128 MiB
    v5e/v6e parts, 48 MiB on v7x's 64 MiB), conservative fallback otherwise."""
    try:
        cap = int(getattr(pltpu.get_tpu_info(), "vmem_capacity_bytes"))
    except Exception:
        cap = 64 << 20
    return max(32 << 20, (cap * 3) // 4)


# ----------------------------------------------------------------------------
# Pallas kernel 1: ConvInUpsampleNetwork.conv_in
#   valid (no padding) Conv1d(aux, aux, kernel=2*aux_context_window+1, no bias)
#   All taps fused into a single (T_out, taps*aux) @ (taps*aux, aux) matmul.
# ----------------------------------------------------------------------------
def _conv_in_kernel(c_ref, w_ref, o_ref, *, taps, t_out):
    fin = jnp.concatenate([c_ref[k:k + t_out, :] for k in range(taps)], axis=-1)
    o_ref[...] = jnp.dot(fin.astype(jnp.bfloat16), w_ref[...],
                         preferred_element_type=jnp.float32).astype(o_ref.dtype)


def conv_in_pallas(c_btc, w_kio):
    # T_feats is upsample_factor x smaller than T_wav; whole-T blocking is fine.
    b, t_in, ca = c_btc.shape
    taps = w_kio.shape[0]
    t_out = t_in - (taps - 1)
    w_fused = w_kio.reshape(taps * ca, ca).astype(jnp.bfloat16)
    return pl.pallas_call(
        functools.partial(_conv_in_kernel, taps=taps, t_out=t_out),
        out_shape=jax.ShapeDtypeStruct((b, t_out, ca), c_btc.dtype),
        grid=(b,),
        in_specs=[
            pl.BlockSpec((None, t_in, ca), lambda i: (i, 0, 0)),
            pl.BlockSpec((taps * ca, ca), lambda i: (0, 0)),
        ],
        out_specs=pl.BlockSpec((None, t_out, ca), lambda i: (i, 0, 0)),
        compiler_params=pltpu.CompilerParams(
            dimension_semantics=("parallel",),
            vmem_limit_bytes=32 * 1024 * 1024),
    )(c_btc, w_fused)


# ----------------------------------------------------------------------------
# Pallas kernel 2: UpsampleNetwork per-scale step.
# Stretch2d(s, 1) followed by a constant-weight 1/(2s+1) smoothing conv with
# zero padding s is algebraically a 3-tap combination of the low-rate signal:
#   out[q*s + p] = ((s-p)*in[q-1] + s*in[q] + (p+1)*in[q+1]) / (2s+1)
# so each scale is a single read + single write of HBM instead of 2s+1 passes.
# ----------------------------------------------------------------------------
def _upsample_kernel(prev_ref, cur_ref, nxt_ref, o_ref, *, s):
    prev = prev_ref[...]                                   # (tin, C) = in[q-1]
    cur = cur_ref[...]                                     # in[q]
    nxt = nxt_ref[...]                                     # in[q+1]
    p = jax.lax.broadcasted_iota(jnp.float32, (1, s, 1), 1)
    inv = np.float32(1.0 / (2 * s + 1))
    o_ref[...] = (prev[:, None, :] * ((np.float32(s) - p) * inv)
                  + cur[:, None, :] * (np.float32(s) * inv)
                  + nxt[:, None, :] * ((p + 1.0) * inv)).astype(o_ref.dtype)


def upsample_smooth_pallas(x_btc, scales, *, tin_max=512):
    for s in scales:
        b, t, c = x_btc.shape
        tin = t if t <= tin_max else tin_max               # full-dim or 8-aligned
        n_tiles = pl.cdiv(t, tin)
        t_pad = n_tiles * tin
        xp = jnp.pad(x_btc, ((0, 0), (1, 1 + t_pad - t), (0, 0)))
        prev = xp[:, 0:t_pad, :]
        cur = xp[:, 1:t_pad + 1, :]
        nxt = xp[:, 2:t_pad + 2, :]
        out = pl.pallas_call(
            functools.partial(_upsample_kernel, s=s),
            out_shape=jax.ShapeDtypeStruct((b, t_pad, s, c), x_btc.dtype),
            grid=(b, n_tiles),
            in_specs=[pl.BlockSpec((None, tin, c), lambda i, j: (i, j, 0))] * 3,
            out_specs=pl.BlockSpec((None, tin, s, c), lambda i, j: (i, j, 0, 0)),
            compiler_params=pltpu.CompilerParams(
                dimension_semantics=("parallel", "parallel")),
        )(prev, cur, nxt)
        x_btc = out.reshape(b, t_pad * s, c)[:, :t * s, :]
    return x_btc


# Plain-JAX original formulation (used only as a validation reference).
def upsample_nearest_smooth(c_btc, scales):
    for s in scales:
        _, t, _ = c_btc.shape
        rep = jnp.repeat(c_btc, s, axis=1)                 # (B, T*s, C)
        xp = jnp.pad(rep, ((0, 0), (s, s), (0, 0)))
        out = jnp.zeros_like(rep)
        w = 1.0 / (2 * s + 1)
        for j in range(2 * s + 1):
            out = out + xp[:, j:j + t * s, :] * w
        c_btc = out
    return c_btc


# ----------------------------------------------------------------------------
# Pallas kernel 3: WaveNet stack, time-tiled with a receptive-field halo.
# ----------------------------------------------------------------------------
def _wavenet_kernel(z_hbm, c_hbm, wf_ref, bf_ref, wg_ref, bg_ref, wo_ref,
                    bo_ref, wl1_ref, bl1_ref, wl2_ref, bl2_ref, o_ref,
                    z_buf, c_buf, xpad, sem,
                    *, dilations, kernel_size, res, skip, half, tile_t, halo,
                    padc, t_valid, blk, win_a, win_b, in_a, in_b):
    n_layers = len(dilations)
    b = pl.program_id(0)
    j = pl.program_id(1)
    nj = pl.num_programs(1)
    slot = j & 1

    def start_fetch(jj, sl):
        t0 = jj * tile_t
        pltpu.make_async_copy(z_hbm.at[b, pl.ds(t0, blk), :],
                              z_buf.at[sl], sem.at[0, sl]).start()
        pltpu.make_async_copy(c_hbm.at[b, pl.ds(t0, blk), :],
                              c_buf.at[sl], sem.at[1, sl]).start()

    # First time-tile of each batch row fetches its own halo window; every tile
    # prefetches the next tile's window so the HBM latency hides behind this
    # tile's compute (cross-grid-step double buffering).
    @pl.when(j == 0)
    def _():
        start_fetch(0, 0)

    @pl.when(j + 1 < nj)
    def _():
        start_fetch(j + 1, (j + 1) & 1)

    # Zero the padded x scratch once per batch row (scratch persists across the
    # sequential time axis): its pad strips guarantee dilated taps that run past
    # the window read zeros, and a full clear keeps unwritten rows deterministic.
    @pl.when(j == 0)
    def _():
        xpad[...] = jnp.zeros_like(xpad)

    # Wait for this tile's window (started either at j==0 above or prefetched by
    # the previous grid step).
    t0 = pl.multiple_of(j * tile_t, 128)
    pltpu.make_async_copy(z_hbm.at[b, pl.ds(t0, blk), :],
                          z_buf.at[slot], sem.at[0, slot]).wait()
    pltpu.make_async_copy(c_hbm.at[b, pl.ds(t0, blk), :],
                          c_buf.at[slot], sem.at[1, slot]).wait()

    zwin = z_buf[slot]                                     # (blk, 1)   f32
    cond = c_buf[slot]                                     # (blk, aux) bf16

    # Sequence-boundary zero padding of the reference only matters on the first
    # and last time tiles; interior tiles skip the per-layer masking entirely.
    g = t0 - halo + jax.lax.broadcasted_iota(jnp.int32, (blk, 1), 0)
    valid = jnp.logical_and(g >= 0, g < t_valid)
    needs_mask = jnp.logical_or(j == 0, t0 + tile_t + halo > t_valid)

    def store_x(row0, xval, vmask):
        @pl.when(needs_mask)
        def _():
            xpad[pl.ds(padc + row0, xval.shape[0]), :] = jnp.where(
                vmask, xval, 0.0).astype(jnp.bfloat16)

        @pl.when(jnp.logical_not(needs_mask))
        def _():
            xpad[pl.ds(padc + row0, xval.shape[0]), :] = xval.astype(jnp.bfloat16)

    # first_conv: Conv1d1x1(1 -> res).  Contraction dim is 1 -> VPU broadcast
    # multiply instead of a degenerate MXU matmul.  Only the rows still needed
    # by layer 0's shrinking window are computed.
    prev_a, prev_b = in_a, in_b
    x = zwin[in_a:in_b] * wf_ref[...] + bf_ref[...]        # (w_in, res) f32

    skips = jnp.zeros((tile_t, skip), jnp.float32)
    sqrt_half = np.float32(math.sqrt(0.5))

    # TODO(synk): at production depth (layers=30) convert this unrolled loop to
    # lax.fori_loop with an SMEM dilation/offset table if the bundle dump shows
    # vreg spills; the 6-layer demo stays unrolled for LLO scheduler visibility.
    for l, d in enumerate(dilations):
        pad = (kernel_size - 1) // 2 * d
        wa, wb = win_a[l], win_b[l]
        wl = wb - wa
        # Write layer-input x into the padded bf16 scratch (masked only on
        # boundary tiles), then read K dilated taps + aux as one fused operand.
        store_x(prev_a, x, valid[prev_a:prev_b])
        taps = [xpad[pl.ds(padc + wa - pad + k * d, wl), :]
                for k in range(kernel_size)]
        # TODO(synk): if the bundle shows lane-relayout copies around this
        # concat at production widths, pad each segment to a 128-lane boundary.
        fin = jnp.concatenate(taps + [cond[wa:wb]], axis=-1)
        # One merged matmul for both gate halves (tanh|sigmoid) and one merged
        # matmul for (res|skip): halves the MXU pushes vs split-N matmuls.
        y = jnp.dot(fin, wg_ref[l],
                    preferred_element_type=jnp.float32) + bg_ref[l]
        gated = jnp.tanh(y[:, :half]) * jax.nn.sigmoid(y[:, half:])
        o = jnp.dot(gated.astype(jnp.bfloat16), wo_ref[l],
                    preferred_element_type=jnp.float32) + bo_ref[l]
        skips = skips + o[halo - wa:halo - wa + tile_t, res:]
        if l + 1 < n_layers:
            # Residual update (dead after the last layer, so skipped there).
            x = (x[wa - prev_a:wa - prev_a + wl] + o[:, :res]) * sqrt_half
            prev_a, prev_b = wa, wb

    skips = skips * np.float32(math.sqrt(1.0 / n_layers))
    h = jnp.maximum(skips, 0.0)
    h = jnp.dot(h.astype(jnp.bfloat16), wl1_ref[...],
                preferred_element_type=jnp.float32) + bl1_ref[...]
    h = jnp.maximum(h, 0.0)
    # Final (skip -> 1) projection as a lane reduction so the store is a
    # lane-dense (tile_t//128, 128) slab instead of a masked (T, 1) column.
    h3 = h.reshape(tile_t // 128, 128, skip)
    out = jnp.sum(h3 * wl2_ref[...], axis=-1) + bl2_ref[...]
    o_ref[0] = out.astype(o_ref.dtype)


def wavenet_pallas(z_bt1, c_btc, p, cfg, dilations, *, tile_t=None):
    b, t, _ = z_bt1.shape
    res = cfg["residual_channels"]
    skip = cfg["skip_channels"]
    gate = cfg["gate_channels"]
    half = gate // 2
    aux = cfg["aux_channels"]
    out_ch = cfg["out_channels"]
    ksz = cfg["kernel_size"]
    n_layers = len(dilations)
    assert out_ch == 1, "lane-dense output path assumes out_channels == 1"
    assert aux == c_btc.shape[-1]

    pads = [(ksz - 1) // 2 * d for d in dilations]
    # Halo = receptive-field half-width of the whole stack (rounded up so all
    # sublane slices stay aligned).  Per-layer shrinking windows below remove
    # most of the halo recompute inside the stack.
    halo = _round_up(sum(pads), 16)
    padc = _round_up(max(pads), 16)

    # Fused / merged weights: bf16 on the MXU path, f32 biases & accumulators.
    bf16 = jnp.bfloat16
    kin = ksz * res + aux
    w_gate = jnp.concatenate(
        [p["w_dil"].reshape(n_layers, ksz * res, gate), p["w_aux"]],
        axis=1).astype(bf16)                               # (L, kin, gate)
    b_gate = p["b_dil"]                                    # (L, 1, gate)
    w_out = p["w_out"].astype(bf16)                        # (L, half, res+skip)
    b_out = p["b_out"]                                     # (L, 1, res+skip)
    wl1 = p["w_last1"].astype(bf16)
    wl2 = p["w_last2"].T                                   # (1, skip) f32
    weights = (p["w_first"], p["b_first"], w_gate, b_gate, w_out, b_out,
               wl1, p["b_last1"], wl2, p["b_last2"])
    weight_bytes = sum(int(np.prod(a.shape)) * a.dtype.itemsize for a in weights)

    budget = _vmem_budget_bytes()

    def vmem_estimate(tt):
        blk_ = tt + 2 * halo
        # lane-padded scratch + double-buffered weights + live temporaries
        scr = (2 * blk_ * 128 * 4
               + 2 * blk_ * max(aux, 128) * 2
               + (blk_ + 2 * padc) * max(res, 128) * 2)
        temps = blk_ * (res * 6 + kin * 2 + gate * 4 + half * 6
                        + (res + skip) * 4 + aux * 2) + tt * skip * 8
        return 2 * weight_bytes + scr + 2 * temps + 2 * tt * 4 + (8 << 20)

    if tile_t is None:
        # Largest generation-appropriate time tile that fits the VMEM budget.
        t_ceil = _round_up(t, 128)
        tile_t = 128
        for cand in (4096, 2048, 1024, 512, 256, 128):
            cand = min(cand, t_ceil)
            if vmem_estimate(cand) <= budget:
                tile_t = cand
                break
    assert tile_t % 128 == 0

    blk = tile_t + 2 * halo
    t_tiles = pl.cdiv(t, tile_t)
    t_pad = t_tiles * tile_t

    # Per-layer shrinking compute windows: layer l only processes rows still
    # needed by the remaining receptive field; the last layer computes only the
    # central tile_t rows.  All window bounds are static, 8-aligned ints.
    win_a = [0] * n_layers
    win_b = [0] * n_layers
    win_a[-1], win_b[-1] = halo, halo + tile_t
    for l in range(n_layers - 2, -1, -1):
        win_a[l] = max(0, _round_down(win_a[l + 1] - pads[l + 1], 8))
        win_b[l] = min(blk, _round_up(win_b[l + 1] + pads[l + 1], 8))
    in_a = max(0, _round_down(win_a[0] - pads[0], 8))
    in_b = min(blk, _round_up(win_b[0] + pads[0], 8))

    z_pad = jnp.pad(z_bt1, ((0, 0), (halo, halo + t_pad - t), (0, 0)))
    # TODO(synk): z could be folded into the cond tensor to halve per-step DMA
    # descriptors, at the cost of bf16 first_conv numerics or f32 cond bytes.
    c_pad = jnp.pad(c_btc, ((0, 0), (halo, halo + t_pad - t), (0, 0))
                    ).astype(bf16)

    def full(a):
        nd = a.ndim
        return pl.BlockSpec(a.shape, lambda i, j, _nd=nd: (0,) * _nd)

    kernel = functools.partial(
        _wavenet_kernel, dilations=tuple(dilations), kernel_size=ksz, res=res,
        skip=skip, half=half, tile_t=tile_t, halo=halo, padc=padc, t_valid=t,
        blk=blk, win_a=tuple(win_a), win_b=tuple(win_b), in_a=in_a, in_b=in_b)

    grid_spec = pltpu.PrefetchScalarGridSpec(
        num_scalar_prefetch=0,
        grid=(b, t_tiles),
        in_specs=[pl.BlockSpec(memory_space=pl.ANY),   # z (halo windows DMA'd)
                  pl.BlockSpec(memory_space=pl.ANY)]   # cond (halo windows DMA'd)
                 + [full(a) for a in weights],
        out_specs=pl.BlockSpec((None, 1, tile_t // 128, 128),
                               lambda i, j: (i, j, 0, 0)),
        scratch_shapes=[
            pltpu.VMEM((2, blk, 1), jnp.float32),          # z window, 2 slots
            pltpu.VMEM((2, blk, aux), jnp.bfloat16),       # cond window, 2 slots
            pltpu.VMEM((blk + 2 * padc, res), jnp.bfloat16),  # padded x scratch
            pltpu.SemaphoreType.DMA((2, 2)),
        ],
    )
    out = pl.pallas_call(
        kernel,
        out_shape=jax.ShapeDtypeStruct((b, t_tiles, tile_t // 128, 128),
                                       jnp.float32),
        grid_spec=grid_spec,
        compiler_params=pltpu.CompilerParams(
            # Batch axis is megacore-parallel; the time axis stays sequential so
            # the cross-step DMA prefetch and per-row scratch init are valid.
            # TODO(synk): for B==1 on v7x, split the time axis across cores
            # instead (costs the cross-step prefetch).
            dimension_semantics=("parallel", "arbitrary"),
            vmem_limit_bytes=int(budget)),
    )(z_pad, c_pad, *weights)
    return out.reshape(b, t_pad)[:, :t].reshape(b, t, 1).astype(z_bt1.dtype)


# ----------------------------------------------------------------------------
# Deterministic synthetic parameters (weight-norm at init is identity for fwd).
# ----------------------------------------------------------------------------
def make_params(key, cfg, dilations):
    res = cfg["residual_channels"]
    skip = cfg["skip_channels"]
    gate = cfg["gate_channels"]
    aux = cfg["aux_channels"]
    out_ch = cfg["out_channels"]
    k = cfg["kernel_size"]
    w = cfg["aux_context_window"]
    n_layers = len(dilations)
    taps = 2 * w + 1

    shapes = {
        "w_conv_in": (taps, aux, aux),
        "w_first": (1, res), "b_first": (1, res),
        "w_dil": (n_layers, k, res, gate), "b_dil": (n_layers, 1, gate),
        "w_aux": (n_layers, aux, gate),
        "w_out": (n_layers, gate // 2, res + skip),
        "b_out": (n_layers, 1, res + skip),
        "w_last1": (skip, skip), "b_last1": (1, skip),
        "w_last2": (skip, out_ch), "b_last2": (1, out_ch),
    }
    keys = jax.random.split(key, len(shapes))
    params = {}
    for (name, shape), kk in zip(shapes.items(), keys):
        scale = 0.05 if name.startswith("w") else 0.01
        params[name] = scale * jax.random.normal(kk, shape, jnp.float32)
    return params


# ----------------------------------------------------------------------------
# Plain-JAX reference (same math; mirrors the kernel's bf16 matmul inputs).
# ----------------------------------------------------------------------------
def _q(a):
    return a.astype(jnp.bfloat16).astype(jnp.float32)


def ref_forward(c, z, p, cfg, dilations):
    w = cfg["aux_context_window"]
    taps = 2 * w + 1
    res = cfg["residual_channels"]
    half = cfg["gate_channels"] // 2
    ksz = cfg["kernel_size"]
    t_o = c.shape[1] - (taps - 1)
    ci = sum(_q(c[:, k:k + t_o, :]) @ _q(p["w_conv_in"][k]) for k in range(taps))
    cu = _q(upsample_nearest_smooth(ci, cfg["upsample_scales"]))

    t = z.shape[1]
    x = z * p["w_first"] + p["b_first"]
    skips = 0.0
    for l, d in enumerate(dilations):
        pad = (ksz - 1) // 2 * d
        residual = x
        xq = _q(jnp.pad(x, ((0, 0), (pad, pad), (0, 0))))
        y = p["b_dil"][l]
        for k in range(ksz):
            y = y + xq[:, k * d:k * d + t, :] @ _q(p["w_dil"][l, k])
        y = y + cu @ _q(p["w_aux"][l])
        gated = jnp.tanh(y[..., :half]) * jax.nn.sigmoid(y[..., half:])
        o = _q(gated) @ _q(p["w_out"][l]) + p["b_out"][l]
        x = (residual + o[..., :res]) * math.sqrt(0.5)
        skips = skips + o[..., res:]
    skips = skips * math.sqrt(1.0 / len(dilations))
    h = jnp.maximum(skips, 0.0)
    h = _q(h) @ _q(p["w_last1"]) + p["b_last1"]
    h = jnp.maximum(h, 0.0)
    return h @ p["w_last2"] + p["b_last2"]


if __name__ == "__main__":
    # Downsized (but structurally identical) hyper-parameters for the demo.
    cfg = dict(
        in_channels=1, out_channels=1, kernel_size=3, layers=6, stacks=3,
        residual_channels=16, gate_channels=32, skip_channels=16,
        aux_channels=16, aux_context_window=2, upsample_scales=[4, 4],
    )
    layers_per_stack = cfg["layers"] // cfg["stacks"]
    dilations = [2 ** (l % layers_per_stack) for l in range(cfg["layers"])]
    upsample_factor = int(np.prod(cfg["upsample_scales"]))

    key = jax.random.PRNGKey(0)
    k_c, k_z, k_p = jax.random.split(key, 3)

    batch = 2
    t_feats = 20  # includes 2*aux_context_window frames of context padding
    t_wav = (t_feats - 2 * cfg["aux_context_window"]) * upsample_factor  # 256

    # PyTorch forward takes c (B, aux, T_feats) and z (B, 1, T_wav); we hold
    # the transposed (B, T, C) layout end to end.
    c = jax.random.normal(k_c, (batch, t_feats, cfg["aux_channels"]), jnp.float32)
    z = jax.random.normal(k_z, (batch, t_wav, 1), jnp.float32)
    params = make_params(k_p, cfg, dilations)

    # --- Pallas forward ---
    c_in = conv_in_pallas(c, params["w_conv_in"])
    c_up = upsample_smooth_pallas(c_in, cfg["upsample_scales"])
    assert c_up.shape[1] == z.shape[1]
    y = wavenet_pallas(z, c_up, params, cfg, dilations)
    y = jax.block_until_ready(y)

    # --- validation ---
    # (1) the 3-tap Pallas upsampler matches the original stretch + box filter
    c_up_ref = upsample_nearest_smooth(c_in, cfg["upsample_scales"])
    up_err = float(jnp.max(jnp.abs(c_up - c_up_ref)))
    assert bool(jnp.allclose(c_up, c_up_ref, atol=1e-5, rtol=1e-5)), up_err
    # (2) end-to-end against the plain-JAX reference
    y_ref = ref_forward(c, z, params, cfg, dilations)
    assert y.shape == (batch, t_wav, cfg["out_channels"])
    assert bool(jnp.all(jnp.isfinite(y)))
    max_err = float(jnp.max(jnp.abs(y - y_ref)))
    assert bool(jnp.allclose(y, y_ref, atol=5e-3, rtol=5e-3)), max_err

    print("KERNEL_OK")
</pallas_src>

<mosaic_0001>
module attributes {stable_mosaic.version = 11 : i64} {
  func.func @_conv_in_kernel(%arg0: i32, %arg1: memref<1x20x16xf32, #tpu.memory_space<vmem>>, %arg2: memref<80x16xbf16, #tpu.memory_space<vmem>>, %arg3: memref<1x16x16xf32, #tpu.memory_space<vmem>>) attributes {dimension_semantics = [#tpu.dimension_semantics<parallel>], iteration_bounds = array<i64: 2>, scalar_prefetch = 0 : i64, scratch_operands = 0 : i64, tpu.core_type = #tpu.core_type<tc>, window_params = [{transform_indices = @transform_0, window_bounds = array<i64: 1, 20, 16>}, {pipeline_mode = #tpu.pipeline_mode<synchronous>, transform_indices = @transform_1, window_bounds = array<i64: 80, 16>}, {transform_indices = @transform_2, window_bounds = array<i64: 1, 16, 16>}]} {
    %c0 = arith.constant 0 : index
    %c0_0 = arith.constant 0 : index
    %c0_1 = arith.constant 0 : index
    %0 = vector.load %arg1[%c0, %c0_0, %c0_1] : memref<1x20x16xf32, #tpu.memory_space<vmem>>, vector<1x16x16xf32>
    %1 = vector.shape_cast %0 : vector<1x16x16xf32> to vector<16x16xf32>
    %c0_2 = arith.constant 0 : index
    %c1 = arith.constant 1 : index
    %c0_3 = arith.constant 0 : index
    %2 = vector.load %arg1[%c0_2, %c1, %c0_3] : memref<1x20x16xf32, #tpu.memory_space<vmem>>, vector<1x16x16xf32>
    %3 = vector.shape_cast %2 : vector<1x16x16xf32> to vector<16x16xf32>
    %c0_4 = arith.constant 0 : index
    %c2 = arith.constant 2 : index
    %c0_5 = arith.constant 0 : index
    %4 = vector.load %arg1[%c0_4, %c2, %c0_5] : memref<1x20x16xf32, #tpu.memory_space<vmem>>, vector<1x16x16xf32>
    %5 = vector.shape_cast %4 : vector<1x16x16xf32> to vector<16x16xf32>
    %c0_6 = arith.constant 0 : index
    %c3 = arith.constant 3 : index
    %c0_7 = arith.constant 0 : index
    %6 = vector.load %arg1[%c0_6, %c3, %c0_7] : memref<1x20x16xf32, #tpu.memory_space<vmem>>, vector<1x16x16xf32>
    %7 = vector.shape_cast %6 : vector<1x16x16xf32> to vector<16x16xf32>
    %c0_8 = arith.constant 0 : index
    %c4 = arith.constant 4 : index
    %c0_9 = arith.constant 0 : index
    %8 = vector.load %arg1[%c0_8, %c4, %c0_9] : memref<1x20x16xf32, #tpu.memory_space<vmem>>, vector<1x16x16xf32>
    %9 = vector.shape_cast %8 : vector<1x16x16xf32> to vector<16x16xf32>
    %10 = tpu.concatenate %1, %3, %5, %7, %9 in 1 : vector<16x16xf32>, vector<16x16xf32>, vector<16x16xf32>, vector<16x16xf32>, vector<16x16xf32> -> vector<16x80xf32>
    %11 = arith.truncf %10 : vector<16x80xf32> to vector<16x80xbf16>
    %c0_10 = arith.constant 0 : index
    %c0_11 = arith.constant 0 : index
    %12 = vector.load %arg2[%c0_10, %c0_11] : memref<80x16xbf16, #tpu.memory_space<vmem>>, vector<80x16xbf16>
    %cst = arith.constant dense<0.000000e+00> : vector<16x16xf32>
    %13 = tpu.matmul %11, %12, %cst {dimension_numbers = #tpu.dot_dimension_numbers<[1], [0], [0], [1], [0, 0, 1, 1], [], []>} : vector<16x80xbf16>, vector<80x16xbf16>, vector<16x16xf32> -> vector<16x16xf32>
    %c0_12 = arith.constant 0 : index
    %c0_13 = arith.constant 0 : index
    %c0_14 = arith.constant 0 : index
    %14 = vector.load %arg3[%c0_12, %c0_13, %c0_14] : memref<1x16x16xf32, #tpu.memory_space<vmem>>, vector<1x16x16xf32>
    %15 = vector.shape_cast %14 : vector<1x16x16xf32> to vector<16x16xf32>
    %16 = vector.shape_cast %13 : vector<16x16xf32> to vector<1x16x16xf32>
    tpu.vector_store %arg3[%c0_12, %c0_13, %c0_14], %16 {strides = array<i32>} : memref<1x16x16xf32, #tpu.memory_space<vmem>>, vector<1x16x16xf32>,
    return
  }
  func.func @transform_0(%arg0: i32) -> (i32, i32, i32) {
    %c0_i32 = arith.constant 0 : i32
    %c0_i32_0 = arith.constant 0 : i32
    %c0_i32_1 = arith.constant 0 : i32
    return %arg0, %c0_i32, %c0_i32_0 : i32, i32, i32
  }
  func.func @transform_1(%arg0: i32) -> (i32, i32) {
    %c0_i32 = arith.constant 0 : i32
    %c0_i32_0 = arith.constant 0 : i32
    %c0_i32_1 = arith.constant 0 : i32
    return %c0_i32, %c0_i32_0 : i32, i32
  }
  func.func @transform_2(%arg0: i32) -> (i32, i32, i32) {
    %c0_i32 = arith.constant 0 : i32
    %c0_i32_0 = arith.constant 0 : i32
    %c0_i32_1 = arith.constant 0 : i32
    return %arg0, %c0_i32, %c0_i32_0 : i32, i32, i32
  }
}

</mosaic_0001>

<bundles_post_ra>
// kernel: tpu_custom_call.1
= control target key start
LH: loop header
LB: loop body
LE: loop exit
PB: predicated region body
PF: predicated region fallthrough
CT: control target
= control target key end

     0   :  { %7 = vsyncpa [#allocation3], 0  ;;  %s694_s0 = inlined_call_operand.vmem [shape: f32[2,20,16], index: 0, kind: input, shape index: {}]   ;;  %s695_s1 = inlined_call_operand.vmem [shape: bf16[80,16], index: 1, kind: input, shape index: {}]   ;;  %s696_s2 = inlined_call_operand.hbm [shape: f32[2,16,16], index: 2, kind: output, shape index: {}]  }
   0x1   :  { %9 = vsyncpa [#allocation3 + $0x1], 0  ;;  %s560_s9 = smov 0   ;;  %s562_s10 = smov 0  }
   0x2   :  { %s564_s11 = smov 0   ;;  %s566_s12 = smov 0  }
   0x3 LB: > { %s581_s13 = sadd.s32 4294967295, %s534_s12   ;;  %s361_s14 = sadd.s32 4294967294, %s534_s12   ;;  %s534_s12 = sphi %s566_s12, %s702_s12   ;;  %s530_s11 = sphi %s564_s11, %s701_s11   ;;  %s526_s10 = sphi %s562_s10, %s700_s10   ;;  %s522_s9 = sphi %s560_s9, %s699_s9  }
   0x4   : > { %s585_s15 = sadd.s32 1, %s534_s12   ;;  %s69_s16 = sadd.s32 1, %s530_s11 }
   0x5   : > { %s66_s17 = ssub.s32 %s534_s12, %s585_s15  ;;  %p79_p0 = scmp.ne.s32.totalorder %s530_s11, %s526_s10 }
   0x6   : > { %p67_p1 = scmp.eq.s32.totalorder %s66_s17, 0  ;;  %p80_p2 = scmp.eq.s32.totalorder %s581_s13, 1 }
   0x7   : > { %p85_p3 = scmp.ne.s32.totalorder %s526_s10, %s522_s9  ;;  %p86_p4 = scmp.eq.s32.totalorder %s361_s14, 1 }
   0x8   : > { %s596_s18 = scalar_select %p67_p1, %s530_s11, %s69_s16  }
   0x9   : > { %p598_p5 = por %p80_p2, %p79_p0  ;;  %p602_p6 = por %p86_p4, %p85_p3 }
   0xa   : > { %p364_p7 = scmp.ge.s32.totalorder %s534_s12, 1  ;;  %p115_p8 = scmp.lt.s32.totalorder %s534_s12, 3 }
   0xc   : > { %p116_p9 = pnand %p364_p7, %p115_p8 }
   0xd   : > { %p137_p10 = scmp.lt.s32.totalorder (!%p116_p9), %s581_s13, 1  ;;  %v467_v0 = vld [vmem:[%s695_s1] sm:$0xff] (!%p116_p9)   ;;  %v536_v1 = vmov (!%p116_p9), 0.0   ;;  %v468_v2 = vld [vmem:[%s695_s1 + $0x8] sm:$0xff] (!%p116_p9)   ;;  %v469_v3 = vld [vmem:[%s695_s1 + $0x10] sm:$0xff] (!%p116_p9)   ;;  %vm537_vm0 = vmmov (!%p116_p9), 0  }
   0xe   : > { %119 = sbr.rel (%p116_p9) target bundleno = 384 (0x180), region = 28  ;;  %385 = vmatprep.subr.bf16.mxu0 (!%p116_p9), %v536_v1  ;;  %395 = vmatprep.mubr.msk.bf16.mxu0 (!%p116_p9), %vm537_vm0, %v536_v1  ;;  %s538_s4 = smov (!%p116_p9), 16   ;;  %v470_v15 = vld [vmem:[%s695_s1 + $0x18] sm:$0xff] (!%p116_p9)   ;;  %v471_v17 = vld [vmem:[%s695_s1 + $0x20] sm:$0xff] (!%p116_p9)   ;;  %vm185_vm1 = vcmask (!%p116_p9), 130048   ;;  %vm188_vm2 = vcmask (!%p116_p9), 261120  }
   0xf   : > { %386 = vmatpush3.bf16.msra.mxu0 (!%p116_p9), %v467_v0  ;;  %s539_s7 = smov (!%p116_p9), 48   ;;  %s540_s8 = smov (!%p116_p9), 32   ;;  %vm191_vm3 = vcmask (!%p116_p9), 392192   ;;  %vm194_vm4 = vcmask (!%p116_p9), 523264   ;;  %vm238_vm5 = vcmask (!%p116_p9), 654336  }
  0x10   : > { %387 = vmatprep.subr.bf16.mxu0 (!%p116_p9), %v536_v1  ;;  %s541_s17 = smov (!%p116_p9), 64   ;;  %s134_s21 = sand.u32 (!%p116_p9), 1, %s526_s10  }
  0x11   : > { %s365_s22 = sshll.u32 (!%p116_p9), %s134_s21, 4  ;;  %s378_s25 = sshll.u32 (!%p116_p9), %s581_s13, 8 }
  0x12   : > { %s649_s28 = scalar_lea.hbm (!%p116_p9), %s696_s2, %s378_s25  ;;  %s542_s30 = smov (!%p116_p9), [#allocation2]  }
  0x13   : > { %388 = vmatpush3.bf16.msra.mxu0 (!%p116_p9), %v468_v2  ;;  %s476_s3 = sshll.u32 (!%p116_p9), %s542_s30, 4  ;;  %s477_s3 = int_to_ptr.vmem [resolvable:$false] %s476_s3 }
  0x14   : > { %389 = vmatprep.subr.bf16.mxu0 (!%p116_p9), %v536_v1 }
  0x15   : > { %s138_s23 = scalar_select %p137_p10, %s581_s13, 1 }
  0x17   : > { %s399_s26 = smul.u32 24, %s138_s23  ;;  %390 = vmatpush3.bf16.msra.mxu0 %v469_v3  ;;  %s136_s23 = scalar_lea.vmem [#allocation2], %s365_s22 }
  0x18   : > { %391 = vmatprep.subr.bf16.mxu0 %v536_v1  ;;  %s299_s24 = sshll.u32 %s136_s23, 4  ;;  %s644_s24 = int_to_ptr.vmem [resolvable:$true] %s299_s24 }
  0x19   : > { %s619_s29 = scalar_lea.vmem %s694_s0, %s399_s26  ;;  %s472_s13 = scalar_lea.vmem %s644_s24, 256 }
  0x1a   : > { %v145_v4 = vld [vmem:[%s619_s29 + $0x1] sm:$0xff]  ;;  %v146_v5 = vld [vmem:[%s619_s29 + $0x9] sm:$0xff]  ;;  %p473_p11 = scmp.ne.s32.totalorder %s644_s24, %s472_s13  ;;  %p479_p0 = scmp.lt.s32.totalorder %s644_s24, %s477_s3 }
  0x1b   : > { %v149_v6 = vld [vmem:[%s619_s29 + $0x3] sm:$0xff]  ;;  %v447_v7 = vpack.i.bf16 %v146_v5, %v145_v4  ;;  %v150_v8 = vld [vmem:[%s619_s29 + $0xb] sm:$0xff]  ;;  %392 = vmatpush3.bf16.msra.mxu0 %v470_v15 }
  0x1c   : > { %v147_v9 = vld [vmem:[%s619_s29 + $0x2] sm:$0xff]  ;;  %v148_v10 = vld [vmem:[%s619_s29 + $0xa] sm:$0xff]  ;;  %v457_v11 = vpack.i.bf16 %v150_v8, %v149_v6  ;;  %393 = vmatprep.subr.bf16.mxu0 %v536_v1  ;;  %p474_p12 = pnand %p473_p11, %p598_p5 }
  0x1d   : > { %v151_v12 = vld [vmem:[%s619_s29 + $0x4] sm:$0xff]  ;;  %v152_v13 = vld [vmem:[%s619_s29 + $0xc] sm:$0xff]  ;;  %448 = vrot.lane.b32.xlu0 %v447_v7, %s538_s4  ;;  %v452_v14 = vpack.i.bf16 %v148_v10, %v147_v9  ;;  %s478_s4 = scalar_lea.vmem %s477_s3, 512 }
  0x1e   : > { %458 = vrot.lane.b32.xlu1 %v457_v11, %s539_s7  ;;  %v462_v16 = vpack.i.bf16 %v152_v13, %v151_v12  ;;  %v143_v22 = vld [vmem:[%s619_s29] sm:$0xff]  ;;  %v144_v23 = vld [vmem:[%s619_s29 + $0x8] sm:$0xff]  ;;  %s653_s29 = scalar_lea.sflag [#allocation3], %s134_s21  ;;  %p475_p13 = pneg %p474_p12 }
  0x1f   : > { %394 = vmatpush3.bf16.msra.mxu0 %v471_v17  ;;  %p480_p1 = scmp.lt.s32.totalorder %s478_s4, %s472_s13 }
  0x21   : > { %453 = vrot.lane.b32.xlu0 %v452_v14, %s540_s8  ;;  %p481_p2 = por %p480_p1, %p479_p0 }
  0x22   : > { %463 = vrot.lane.b32.xlu1 %v462_v16, %s541_s17 }
  0x23   : > { %p482_p3 = pnand %p481_p2, %p475_p13 }
  0x8f   : > { %v449_v18 = vpop.permute.xlu0 %448 }
  0x90   : > { %v459_v19 = vpop.permute.xlu1 %458  ;;  %v451_v20 = vunpack.i.h.bf16 %v449_v18  ;;  %v450_v21 = vunpack.i.l.bf16 %v449_v18 }
  0x91   : > { %v461_v25 = vunpack.i.h.bf16 %v459_v19  ;;  %v460_v26 = vunpack.i.l.bf16 %v459_v19 }
  0x92   : > { %v186_v30 = vsel %vm185_vm1, %v143_v22, %v450_v21  ;;  %v187_v31 = vsel %vm185_vm1, %v144_v23, %v451_v20 }
  0x93   : > { %v454_v24 = vpop.permute.xlu0 %453 }
  0x94   : > { %v456_v27 = vunpack.i.h.bf16 %v454_v24  ;;  %v455_v28 = vunpack.i.l.bf16 %v454_v24  ;;  %v464_v29 = vpop.permute.xlu1 %463 }
  0x95   : > { %v466_v32 = vunpack.i.h.bf16 %v464_v29  ;;  %v465_v33 = vunpack.i.l.bf16 %v464_v29 }
  0x96   : > { %v189_v34 = vsel %vm188_vm2, %v186_v30, %v455_v28  ;;  %v190_v35 = vsel %vm188_vm2, %v187_v31, %v456_v27 }
  0x97   : > { %v192_v36 = vsel %vm191_vm3, %v189_v34, %v460_v26  ;;  %v193_v37 = vsel %vm191_vm3, %v190_v35, %v461_v25 }
  0x98   : > { %v195_v38 = vsel %vm194_vm4, %v192_v36, %v465_v33  ;;  %v196_v39 = vsel %vm194_vm4, %v193_v37, %v466_v32 }
  0x99   : > { %v197_v40 = vpack.c.bf16 %v196_v39, %v195_v38 }
  0x9b   : > { %396 = vmatmul.mubr.msk.bf16.vlgmr.msra.gmra.mrb[0].mxu0 %vm238_vm5, %v197_v40 }
 0x16e   : > { %v276_v41 = vpop.f32.mrb[0].mxu0 }
 0x16f   : > { %283 = vst.msk [vmem:[%s136_s23] sm:$0xff] %vm185_vm1, %v276_v41  ;;  %v397_v42 = vpop.f32.mrb[1].mxu0 }
 0x170   : > { %v279_v43 = vpop.f32.mrb[2].mxu0 }
 0x171   : > { %284 = vst.msk [vmem:[%s136_s23 + $0x8] sm:$0xff] %vm185_vm1, %v279_v43  ;;  %v398_v44 = vpop.f32.mrb[3].mxu0 }
 0x172   : > { %485 = shalt.err (!%p482_p3)
}
 0x173   : > { %s486_s5 = scalar_lea.hbm %s649_s28, 256  ;;  %s490_s8 = scalar_lea.hbm %s696_s2, 512 }
 0x174   : > { %p487_p4 = scmp.ne.s32.totalorder %s649_s28, %s486_s5  ;;  %p491_p9 = scmp.lt.u32.totalorder %s649_s28, %s696_s2 }
 0x175   : > { %p492_p10 = scmp.lt.u32.totalorder %s490_s8, %s486_s5  ;;  %p494_p12 = scmp.lt.u32.totalorder %s486_s5, %s649_s28 }
 0x176   : > { %p488_p7 = pnand %p487_p4, %p598_p5 }
 0x177   : > { %p493_p11 = por %p492_p10, %p491_p9 }
 0x178   : > { %p489_p8 = pneg %p488_p7 }
 0x179   : > { %p495_p13 = por %p494_p12, %p493_p11 }
 0x17b   : > { %p496_p0 = pnand %p495_p13, %p489_p8 }
 0x17d   : > { %499 = shalt.err (!%p496_p0)
}
 0x17e   : > { %s543_s17 = smov 128   ;;  %s544_s21 = smov 8  }
 0x17f   : > { %400 = dma.vmem_to_hbm [thread:$0]  (%p598_p5), %s644_s24, 256, %s649_s28, %s653_s29, %s543_s17, %s543_s17, %s544_s21  }
 0x180 PF: > { %p406_p1 = scmp.ge.s32.totalorder %s534_s12, 2  ;;  %s314_s22 = sand.u32 1, %s522_s9  }
 0x181   : > { %s315_s23 = scalar_lea.sflag [#allocation3], %s314_s22 }
 0x182   : > { %p403_p2 = pnand %p406_p1, %p602_p6 }
 0x184   : > { %517 = dma.done.wait (!%p403_p2), %s315_s23, 256  }
 0x185   : > { %519 = vsyncadd (!%p403_p2), %s315_s23, 4294967040  ;;  %p12_p3 = scmp.ge.s32.totalorder %s585_s15, 4   ;;  %s699_s9 = smov %s526_s10 }
 0x186   : > { %s700_s10 = smov %s530_s11  ;;  %s701_s11 = smov %s596_s18 }
 0x187   : > { %s702_s12 = smov %s585_s15  ;;  %14 = sbr.rel (!%p12_p3) target bundleno = 3 (0x3), region = 63 }
 0x18e   :  { %320 = vsyncpa [#allocation3], 1 }
 0x18f   :  { %322 = vsyncpa [#allocation3 + $0x1], 1 }

</bundles_post_ra>
